<compile_context>
chip_gen: v6e
topology: v6e:2x2x1
jax: 0.10.0
libtpu: 0.0.40
codegen_flags: <defaults>
</compile_context>

<pallas_src>
import jax
import jax.numpy as jnp
from jax.experimental import pallas as pl
from jax.experimental.pallas import tpu as pltpu

EPS = 1e-5
PRELU_ALPHA = 0.1  # F.prelu(x, torch.tensor(0.1))
LANE = 128
SUBLANE = 8


def _round_up(x, m):
    return (x + m - 1) // m * m


def _prelu(x):
    return jnp.where(x >= 0, x, PRELU_ALPHA * x)


# --------------------------------------------------------------------------
# Kernel: one batch tile, all weights resident. dot -> PReLU -> dot -> PReLU -> dot
# --------------------------------------------------------------------------
def mlp_kernel(x_ref, w1_ref, b1_ref, w2_ref, b2_ref, w3_ref, b3_ref, o_ref):
    x = x_ref[...]  # [TB, F] bf16

    h = jnp.dot(x, w1_ref[...], preferred_element_type=jnp.float32) + b1_ref[...]
    h = _prelu(h).astype(w2_ref.dtype)

    h = jnp.dot(h, w2_ref[...], preferred_element_type=jnp.float32) + b2_ref[...]
    h = _prelu(h).astype(w3_ref.dtype)

    out = jnp.dot(h, w3_ref[...], preferred_element_type=jnp.float32) + b3_ref[...]
    o_ref[...] = out.astype(o_ref.dtype)


# --------------------------------------------------------------------------
# One-time parameter transform: fold BN + bias, transpose, pad to 128 lanes, cast.
# --------------------------------------------------------------------------
def prepare_params(params, batchnorm1='On', batchnorm2='On',
                   compute_dtype=jnp.bfloat16):
    def bn_scale_shift(bn):
        gamma, beta, mean, var = bn[0], bn[1], bn[2], bn[3]
        scale = gamma * jax.lax.rsqrt(var + EPS)
        shift = beta - mean * scale
        return scale, shift

    # fc1, optionally with fc0_bn folded on its input side.
    w1t = params['w1'].T.astype(jnp.float32)          # [F, H0]
    b1 = params['b1'].astype(jnp.float32)
    if batchnorm1 == 'On':
        s0, t0 = bn_scale_shift(params['bn0'])
        b1 = b1 + t0 @ w1t
        w1t = s0[:, None] * w1t

    # fc2, optionally with fc1_bn (applied after PReLU) folded on its input side.
    w2t = params['w2'].T.astype(jnp.float32)          # [H0, H1]
    b2 = params['b2'].astype(jnp.float32)
    if batchnorm1 == 'On':
        s1, t1 = bn_scale_shift(params['bn1'])
        b2 = b2 + t1 @ w2t
        w2t = s1[:, None] * w2t

    # fc3, optionally with fc2_bn folded on its input side.
    w3t = params['w3'].T.astype(jnp.float32)          # [H1, L]
    b3 = params['b3'].astype(jnp.float32)
    if batchnorm2 == 'On':
        s2, t2 = bn_scale_shift(params['bn2'])
        b3 = b3 + t2 @ w3t
        w3t = s2[:, None] * w3t

    F, H0 = w1t.shape
    H1 = w2t.shape[1]
    L = w3t.shape[1]
    H0p, H1p, Lp = _round_up(H0, LANE), _round_up(H1, LANE), _round_up(L, LANE)

    def pad2(a, rows, cols):
        return jnp.pad(a, ((0, rows - a.shape[0]), (0, cols - a.shape[1])))

    def pad_bias(b, cols):
        return jnp.pad(b, (0, cols - b.shape[0])).reshape(1, cols)

    # Zero-padded columns produce 0 activations (bias pad = 0, PReLU(0) = 0) and
    # the matching zero-padded weight rows contribute nothing downstream.
    return dict(
        w1=pad2(w1t, F, H0p).astype(compute_dtype), b1=pad_bias(b1, H0p),
        w2=pad2(w2t, H0p, H1p).astype(compute_dtype), b2=pad_bias(b2, H1p),
        w3=pad2(w3t, H1p, Lp).astype(compute_dtype), b3=pad_bias(b3, Lp),
        n_features=F, n_labels=L, compute_dtype=compute_dtype,
    )


# --------------------------------------------------------------------------
# Wrapper: batch-tiled pallas_call
# --------------------------------------------------------------------------
def mlp_forward(x, prep, *, block_b=512):
    B, F = x.shape
    assert F == prep['n_features']
    dtype = prep['compute_dtype']
    L = prep['n_labels']
    Lp = prep['b3'].shape[1]

    # Tile the batch; pad it to a multiple of the tile so every block is full.
    TB = min(block_b, _round_up(B, SUBLANE))
    Bp = _round_up(B, TB)
    xp = x.astype(dtype)
    if Bp != B:
        xp = jnp.pad(xp, ((0, Bp - B), (0, 0)))

    resident = lambda shape: pl.BlockSpec(shape, lambda i: (0, 0))

    out = pl.pallas_call(
        mlp_kernel,
        out_shape=jax.ShapeDtypeStruct((Bp, Lp), jnp.float32),
        grid=(Bp // TB,),
        in_specs=[
            pl.BlockSpec((TB, F), lambda i: (i, 0)),   # x tile streams over batch
            resident(prep['w1'].shape), resident(prep['b1'].shape),
            resident(prep['w2'].shape), resident(prep['b2'].shape),
            resident(prep['w3'].shape), resident(prep['b3'].shape),
        ],
        out_specs=pl.BlockSpec((TB, Lp), lambda i: (i, 0)),
        compiler_params=pltpu.CompilerParams(
            dimension_semantics=("parallel",)),
    )(xp, prep['w1'], prep['b1'], prep['w2'], prep['b2'], prep['w3'], prep['b3'])

    return out[:B, :L]


# --------------------------------------------------------------------------
# Init (PyTorch conventions) + pure-JAX reference
# --------------------------------------------------------------------------
def init_params(key, n_features, n_hidden_layers, n_labels):
    h0, h1 = n_hidden_layers
    k1, k2, k3, k4, k5, k6 = jax.random.split(key, 6)

    def linear_init(kw, kb, fan_in, fan_out):
        bound = 1.0 / jnp.sqrt(fan_in)
        w = jax.random.uniform(kw, (fan_out, fan_in), jnp.float32, -bound, bound)
        b = jax.random.uniform(kb, (fan_out,), jnp.float32, -bound, bound)
        return w, b

    def bn_init(c):
        # [gamma=1, beta=0, running_mean=0, running_var=1]
        return jnp.stack([jnp.ones((c,), jnp.float32),
                          jnp.zeros((c,), jnp.float32),
                          jnp.zeros((c,), jnp.float32),
                          jnp.ones((c,), jnp.float32)], axis=0)

    w1, b1 = linear_init(k1, k2, n_features, h0)
    w2, b2 = linear_init(k3, k4, h0, h1)
    w3, b3 = linear_init(k5, k6, h1, n_labels)

    return dict(bn0=bn_init(n_features),
                w1=w1, b1=b1, bn1=bn_init(h0),
                w2=w2, b2=b2, bn2=bn_init(h1),
                w3=w3, b3=b3)


def mlp_reference(x, params, batchnorm1='On', batchnorm2='On'):
    def bn(x, p):
        return (x - p[2]) * p[0] / jnp.sqrt(p[3] + EPS) + p[1]

    def prelu(x):
        return jnp.where(x >= 0, x, PRELU_ALPHA * x)

    if batchnorm1 == 'On':
        x = bn(x, params['bn0'])
    x = prelu(x @ params['w1'].T + params['b1'])
    if batchnorm1 == 'On':
        x = bn(x, params['bn1'])
    x = prelu(x @ params['w2'].T + params['b2'])
    if batchnorm2 == 'On':
        x = bn(x, params['bn2'])
    return x @ params['w3'].T + params['b3']


if __name__ == "__main__":
    key = jax.random.PRNGKey(0)
    k_x, k_p = jax.random.split(key)

    B = 8
    n_features = 32
    n_hidden_layers = (64, 48)
    n_labels = 8

    x = jax.random.normal(k_x, (B, n_features), jnp.float32)
    params = init_params(k_p, n_features, n_hidden_layers, n_labels)

    # BN on both branches
    prep = prepare_params(params, batchnorm1='On', batchnorm2='On')
    out = jax.block_until_ready(mlp_forward(x, prep))
    ref = mlp_reference(x, params, batchnorm1='On', batchnorm2='On')
    assert out.shape == (B, n_labels)
    assert jnp.allclose(out, ref, atol=5e-2, rtol=5e-2), "mismatch vs JAX reference (BN on)"

    # BN off (unused bn slabs never enter the kernel)
    prep_off = prepare_params(params, batchnorm1='Off', batchnorm2='Off')
    out_off = jax.block_until_ready(mlp_forward(x, prep_off))
    ref_off = mlp_reference(x, params, batchnorm1='Off', batchnorm2='Off')
    assert jnp.allclose(out_off, ref_off, atol=5e-2, rtol=5e-2), "mismatch vs JAX reference (BN off)"

    print("KERNEL_OK")
</pallas_src>

<mosaic_0001>
module attributes {stable_mosaic.version = 11 : i64} {
  func.func @mlp_kernel(%arg0: i32, %arg1: memref<8x32xbf16, #tpu.memory_space<vmem>>, %arg2: memref<32x128xbf16, #tpu.memory_space<vmem>>, %arg3: memref<1x128xf32, #tpu.memory_space<vmem>>, %arg4: memref<128x128xbf16, #tpu.memory_space<vmem>>, %arg5: memref<1x128xf32, #tpu.memory_space<vmem>>, %arg6: memref<128x128xbf16, #tpu.memory_space<vmem>>, %arg7: memref<1x128xf32, #tpu.memory_space<vmem>>, %arg8: memref<8x128xf32, #tpu.memory_space<vmem>>) attributes {dimension_semantics = [#tpu.dimension_semantics<parallel>], iteration_bounds = array<i64: 1>, scalar_prefetch = 0 : i64, scratch_operands = 0 : i64, tpu.core_type = #tpu.core_type<tc>, window_params = [{transform_indices = @transform_0, window_bounds = array<i64: 8, 32>}, {pipeline_mode = #tpu.pipeline_mode<synchronous>, transform_indices = @transform_1, window_bounds = array<i64: 32, 128>}, {pipeline_mode = #tpu.pipeline_mode<synchronous>, transform_indices = @transform_2, window_bounds = array<i64: 1, 128>}, {pipeline_mode = #tpu.pipeline_mode<synchronous>, transform_indices = @transform_3, window_bounds = array<i64: 128, 128>}, {pipeline_mode = #tpu.pipeline_mode<synchronous>, transform_indices = @transform_4, window_bounds = array<i64: 1, 128>}, {pipeline_mode = #tpu.pipeline_mode<synchronous>, transform_indices = @transform_5, window_bounds = array<i64: 128, 128>}, {pipeline_mode = #tpu.pipeline_mode<synchronous>, transform_indices = @transform_6, window_bounds = array<i64: 1, 128>}, {transform_indices = @transform_7, window_bounds = array<i64: 8, 128>}]} {
    %c0 = arith.constant 0 : index
    %c0_0 = arith.constant 0 : index
    %0 = vector.load %arg1[%c0, %c0_0] : memref<8x32xbf16, #tpu.memory_space<vmem>>, vector<8x32xbf16>
    %c0_1 = arith.constant 0 : index
    %c0_2 = arith.constant 0 : index
    %1 = vector.load %arg2[%c0_1, %c0_2] : memref<32x128xbf16, #tpu.memory_space<vmem>>, vector<32x128xbf16>
    %cst = arith.constant dense<0.000000e+00> : vector<8x128xf32>
    %2 = tpu.matmul %0, %1, %cst {dimension_numbers = #tpu.dot_dimension_numbers<[1], [0], [0], [1], [0, 0, 1, 1], [], []>} : vector<8x32xbf16>, vector<32x128xbf16>, vector<8x128xf32> -> vector<8x128xf32>
    %c0_3 = arith.constant 0 : index
    %c0_4 = arith.constant 0 : index
    %3 = vector.load %arg3[%c0_3, %c0_4] : memref<1x128xf32, #tpu.memory_space<vmem>>, vector<1x128xf32>
    %4 = vector.broadcast %3 : vector<1x128xf32> to vector<8x128xf32>
    %5 = arith.addf %2, %4 : vector<8x128xf32>
    %cst_5 = arith.constant 0.000000e+00 : f32
    %6 = vector.broadcast %cst_5 : f32 to vector<8x128xf32>
    %7 = arith.cmpf oge, %5, %6 : vector<8x128xf32>
    %cst_6 = arith.constant 1.000000e-01 : f32
    %8 = vector.broadcast %cst_6 : f32 to vector<8x128xf32>
    %9 = arith.mulf %8, %5 : vector<8x128xf32>
    %10 = arith.select %7, %5, %9 : vector<8x128xi1>, vector<8x128xf32>
    %11 = arith.truncf %10 : vector<8x128xf32> to vector<8x128xbf16>
    %c0_7 = arith.constant 0 : index
    %c0_8 = arith.constant 0 : index
    %12 = vector.load %arg4[%c0_7, %c0_8] : memref<128x128xbf16, #tpu.memory_space<vmem>>, vector<128x128xbf16>
    %cst_9 = arith.constant dense<0.000000e+00> : vector<8x128xf32>
    %13 = tpu.matmul %11, %12, %cst_9 {dimension_numbers = #tpu.dot_dimension_numbers<[1], [0], [0], [1], [0, 0, 1, 1], [], []>} : vector<8x128xbf16>, vector<128x128xbf16>, vector<8x128xf32> -> vector<8x128xf32>
    %c0_10 = arith.constant 0 : index
    %c0_11 = arith.constant 0 : index
    %14 = vector.load %arg5[%c0_10, %c0_11] : memref<1x128xf32, #tpu.memory_space<vmem>>, vector<1x128xf32>
    %15 = vector.broadcast %14 : vector<1x128xf32> to vector<8x128xf32>
    %16 = arith.addf %13, %15 : vector<8x128xf32>
    %cst_12 = arith.constant 0.000000e+00 : f32
    %17 = vector.broadcast %cst_12 : f32 to vector<8x128xf32>
    %18 = arith.cmpf oge, %16, %17 : vector<8x128xf32>
    %cst_13 = arith.constant 1.000000e-01 : f32
    %19 = vector.broadcast %cst_13 : f32 to vector<8x128xf32>
    %20 = arith.mulf %19, %16 : vector<8x128xf32>
    %21 = arith.select %18, %16, %20 : vector<8x128xi1>, vector<8x128xf32>
    %22 = arith.truncf %21 : vector<8x128xf32> to vector<8x128xbf16>
    %c0_14 = arith.constant 0 : index
    %c0_15 = arith.constant 0 : index
    %23 = vector.load %arg6[%c0_14, %c0_15] : memref<128x128xbf16, #tpu.memory_space<vmem>>, vector<128x128xbf16>
    %cst_16 = arith.constant dense<0.000000e+00> : vector<8x128xf32>
    %24 = tpu.matmul %22, %23, %cst_16 {dimension_numbers = #tpu.dot_dimension_numbers<[1], [0], [0], [1], [0, 0, 1, 1], [], []>} : vector<8x128xbf16>, vector<128x128xbf16>, vector<8x128xf32> -> vector<8x128xf32>
    %c0_17 = arith.constant 0 : index
    %c0_18 = arith.constant 0 : index
    %25 = vector.load %arg7[%c0_17, %c0_18] : memref<1x128xf32, #tpu.memory_space<vmem>>, vector<1x128xf32>
    %26 = vector.broadcast %25 : vector<1x128xf32> to vector<8x128xf32>
    %27 = arith.addf %24, %26 : vector<8x128xf32>
    %c0_19 = arith.constant 0 : index
    %c0_20 = arith.constant 0 : index
    %28 = vector.load %arg8[%c0_19, %c0_20] : memref<8x128xf32, #tpu.memory_space<vmem>>, vector<8x128xf32>
    tpu.vector_store %arg8[%c0_19, %c0_20], %27 {strides = array<i32>} : memref<8x128xf32, #tpu.memory_space<vmem>>, vector<8x128xf32>,
    return
  }
  func.func @transform_0(%arg0: i32) -> (i32, i32) {
    %c0_i32 = arith.constant 0 : i32
    %c0_i32_0 = arith.constant 0 : i32
    return %arg0, %c0_i32 : i32, i32
  }
  func.func @transform_1(%arg0: i32) -> (i32, i32) {
    %c0_i32 = arith.constant 0 : i32
    %c0_i32_0 = arith.constant 0 : i32
    %c0_i32_1 = arith.constant 0 : i32
    return %c0_i32, %c0_i32_0 : i32, i32
  }
  func.func @transform_2(%arg0: i32) -> (i32, i32) {
    %c0_i32 = arith.constant 0 : i32
    %c0_i32_0 = arith.constant 0 : i32
    %c0_i32_1 = arith.constant 0 : i32
    return %c0_i32, %c0_i32_0 : i32, i32
  }
  func.func @transform_3(%arg0: i32) -> (i32, i32) {
    %c0_i32 = arith.constant 0 : i32
    %c0_i32_0 = arith.constant 0 : i32
    %c0_i32_1 = arith.constant 0 : i32
    return %c0_i32, %c0_i32_0 : i32, i32
  }
  func.func @transform_4(%arg0: i32) -> (i32, i32) {
    %c0_i32 = arith.constant 0 : i32
    %c0_i32_0 = arith.constant 0 : i32
    %c0_i32_1 = arith.constant 0 : i32
    return %c0_i32, %c0_i32_0 : i32, i32
  }
  func.func @transform_5(%arg0: i32) -> (i32, i32) {
    %c0_i32 = arith.constant 0 : i32
    %c0_i32_0 = arith.constant 0 : i32
    %c0_i32_1 = arith.constant 0 : i32
    return %c0_i32, %c0_i32_0 : i32, i32
  }
  func.func @transform_6(%arg0: i32) -> (i32, i32) {
    %c0_i32 = arith.constant 0 : i32
    %c0_i32_0 = arith.constant 0 : i32
    %c0_i32_1 = arith.constant 0 : i32
    return %c0_i32, %c0_i32_0 : i32, i32
  }
  func.func @transform_7(%arg0: i32) -> (i32, i32) {
    %c0_i32 = arith.constant 0 : i32
    %c0_i32_0 = arith.constant 0 : i32
    return %arg0, %c0_i32 : i32, i32
  }
}

</mosaic_0001>

<bundles_post_ra>
// kernel: tpu_custom_call.1
= control target key start
LH: loop header
LB: loop body
LE: loop exit
PB: predicated region body
PF: predicated region fallthrough
CT: control target
= control target key end

     0   :  { %12 = vsyncpa [#allocation3], 0  ;;  %s729_s0 = inlined_call_operand.hbm [shape: bf16[8,32], index: 0, kind: input, shape index: {}]   ;;  %s730_s1 = inlined_call_operand.hbm [shape: bf16[32,128], index: 1, kind: input, shape index: {}]   ;;  %s731_s2 = inlined_call_operand.vmem [shape: f32[1,128], index: 2, kind: input, shape index: {}]   ;;  %s732_s3 = inlined_call_operand.hbm [shape: bf16[128,128], index: 3, kind: input, shape index: {}]   ;;  %s733_s4 = inlined_call_operand.vmem [shape: f32[1,128], index: 4, kind: input, shape index: {}]   ;;  %s734_s5 = inlined_call_operand.hbm [shape: bf16[128,128], index: 5, kind: input, shape index: {}]   ;;  %s735_s6 = inlined_call_operand.vmem [shape: f32[1,128], index: 6, kind: input, shape index: {}]   ;;  %s736_s7 = inlined_call_operand.hbm [shape: f32[8,128], index: 7, kind: output, shape index: {}]  }
   0x1   :  { %13 = vsyncpa [#allocation6], 0 }
   0x2   :  { %14 = vsyncpa [#allocation9], 0 }
   0x3   :  { %15 = vsyncpa [#allocation4], 0  ;;  %s623_s24 = smov [#allocation5]  }
   0x4   :  { %s31_s25 = sshll.u32 %s623_s24, 4  ;;  %s32_s25 = int_to_ptr.vmem [resolvable:$true] %s31_s25 }
   0x5   :  { %s523_s26 = scalar_lea.vmem %s32_s25, 256  ;;  %p528_p1 = scmp.lt.s32.totalorder %s32_s25, %s32_s25 }
   0x6   :  { %p524_p0 = scmp.ne.s32.totalorder %s32_s25, %s523_s26  ;;  %p529_p2 = scmp.lt.s32.totalorder %s523_s26, %s523_s26 }
   0x8   :  { %p530_p3 = por %p529_p2, %p528_p1 }
   0xa   :  { %p531_p4 = pnand %p530_p3, %p524_p0 }
   0xc   :  { %534 = shalt.err (!%p531_p4)
}
   0xd   :  { %s624_s27 = smov 64   ;;  %s625_s28 = smov 4  }
   0xe   :  { %37 = dma.hbm_to_vmem [thread:$0]  %s730_s1, 256, %s32_s25, [#allocation6], %s624_s27, %s624_s27, %s625_s28  }
   0xf   :  { %s626_s8 = smov [#allocation2]   ;;  %s627_s10 = smov [#allocation7]  }
  0x10   :  { %s22_s9 = sshll.u32 %s626_s8, 4  ;;  %s45_s11 = sshll.u32 %s627_s10, 4  ;;  %s23_s9 = int_to_ptr.vmem [resolvable:$true] %s22_s9  ;;  %s46_s11 = int_to_ptr.vmem [resolvable:$true] %s45_s11 }
  0x11   :  { %s543_s12 = scalar_lea.vmem %s23_s9, 64  ;;  %p548_p6 = scmp.lt.s32.totalorder %s23_s9, %s23_s9 }
  0x12   :  { %p544_p5 = scmp.ne.s32.totalorder %s23_s9, %s543_s12  ;;  %p549_p7 = scmp.lt.s32.totalorder %s543_s12, %s543_s12 }
  0x14   :  { %p550_p8 = por %p549_p7, %p548_p6 }
  0x16   :  { %p551_p9 = pnand %p550_p8, %p544_p5 }
  0x18   :  { %554 = shalt.err (!%p551_p9)
}
  0x19   :  { %25 = dma.hbm_to_vmem [thread:$0]  %s729_s0, 64, %s23_s9, [#allocation3]  }
  0x1a   :  { %s563_s15 = scalar_lea.vmem %s46_s11, 1024  ;;  %p568_p11 = scmp.lt.s32.totalorder %s46_s11, %s46_s11 }
  0x1b   :  { %p564_p10 = scmp.ne.s32.totalorder %s46_s11, %s563_s15  ;;  %p569_p12 = scmp.lt.s32.totalorder %s563_s15, %s563_s15 }
  0x1d   :  { %p570_p13 = por %p569_p12, %p568_p11 }
  0x1f   :  { %p571_p0 = pnand %p570_p13, %p564_p10 }
  0x21   :  { %574 = shalt.err (!%p571_p0)
}
  0x22   :  { %51 = dma.hbm_to_vmem [thread:$0]  %s732_s3, 1024, %s46_s11, [#allocation6], %s624_s27, %s624_s27, %s625_s28  }
  0x23   :  { %s628_s17 = smov [#allocation8]  }
  0x24   :  { %s59_s18 = sshll.u32 %s628_s17, 4  ;;  %s60_s18 = int_to_ptr.vmem [resolvable:$true] %s59_s18 }
  0x25   :  { %s583_s19 = scalar_lea.vmem %s60_s18, 1024  ;;  %p588_p2 = scmp.lt.s32.totalorder %s60_s18, %s60_s18 }
  0x26   :  { %p584_p1 = scmp.ne.s32.totalorder %s60_s18, %s583_s19  ;;  %p589_p3 = scmp.lt.s32.totalorder %s583_s19, %s583_s19 }
  0x28   :  { %p590_p4 = por %p589_p3, %p588_p2 }
  0x2a   :  { %p591_p5 = pnand %p590_p4, %p584_p1 }
  0x2c   :  { %594 = shalt.err (!%p591_p5)
}
  0x2d   :  { %65 = dma.hbm_to_vmem [thread:$0]  %s734_s5, 1024, %s60_s18, [#allocation9], %s624_s27, %s624_s27, %s625_s28  }
  0x2e   :  { %615 = dma.done.wait [#allocation3], 64  }
  0x2f   :  { %616 = vsyncadd [#allocation3], 4294967232 }
  0x30   :  { %617 = dma.done.wait [#allocation6], 1280  }
  0x31   :  { %618 = vsyncadd [#allocation6], 4294966016 }
  0x32   :  { %619 = dma.done.wait [#allocation9], 1024  }
  0x33   :  { %620 = vsyncadd [#allocation9], 4294966272  ;;  %v629_v0 = vmov 0.0   ;;  %vm630_vm0 = vmmov 0   ;;  %v497_v1 = vld [vmem:[#allocation5 + $0x8] sm:$0xff]   ;;  %v498_v2 = vld [vmem:[#allocation5] sm:$0xff]  }
  0x34   :  { %440 = vmatprep.subr.bf16.mxu0 %v629_v0  ;;  %444 = vmatprep.mubr.msk.bf16.mxu0 %vm630_vm0, %v629_v0  ;;  %v499_v3 = vld [vmem:[#allocation7 + $0x38] sm:$0xff]   ;;  %vm105_vm1 = vcmask 261120   ;;  %v500_v4 = vld [vmem:[#allocation7 + $0x30] sm:$0xff]   ;;  %v81_v5 = vld [vmem:[#allocation2] sm:$0xf]  ;;  %s631_s24 = smov [#allocation10]  }
  0x35   :  { %448 = vmatprep.subr.bf16.mxu1 %v629_v0  ;;  %464 = vmatprep.mubr.msk.bf16.mxu1 %vm630_vm0, %v629_v0  ;;  %v501_v6 = vld [vmem:[#allocation7 + $0x28] sm:$0xff]   ;;  %v502_v7 = vld [vmem:[#allocation7 + $0x20] sm:$0xff]   ;;  %v503_v8 = vld [vmem:[#allocation7 + $0x18] sm:$0xff]   ;;  %s386_s25 = sshll.u32 %s631_s24, 4  ;;  %s387_s25 = int_to_ptr.vmem [resolvable:$true] %s386_s25 }
  0x36   :  { %441 = vmatpush3.bf16.msra.mxu0 %v497_v1  ;;  %449 = vmatpush3.bf16.msra.mxu1 %v499_v3  ;;  %v504_v9 = vld [vmem:[#allocation7 + $0x10] sm:$0xff]   ;;  %v505_v10 = vld [vmem:[#allocation7 + $0x8] sm:$0xff]   ;;  %v506_v11 = vld [vmem:[#allocation7] sm:$0xff]   ;;  %p600_p7 = scmp.lt.s32.totalorder %s387_s25, %s387_s25 }
  0x37   :  { %442 = vmatprep.subr.bf16.mxu0 %v629_v0  ;;  %450 = vmatprep.subr.bf16.mxu1 %v629_v0  ;;  %v507_v12 = vld [vmem:[#allocation8 + $0x38] sm:$0xff]   ;;  %v508_v13 = vld [vmem:[#allocation8 + $0x30] sm:$0xff]   ;;  %v509_v14 = vld [vmem:[#allocation8 + $0x28] sm:$0xff]  }
  0x38   :  { %v510_v15 = vld [vmem:[#allocation8 + $0x20] sm:$0xff]   ;;  %v511_v16 = vld [vmem:[#allocation8 + $0x18] sm:$0xff]   ;;  %v512_v17 = vld [vmem:[#allocation8 + $0x10] sm:$0xff]  }
  0x39   :  { %v397_v18 = vld [vmem:[%s731_s2] ss:$0 sm:$0xff]  ;;  %v514_v28 = vld [vmem:[#allocation8] sm:$0xff]  }
  0x3a   :  { %443 = vmatpush3.bf16.msra.mxu0 %v498_v2  ;;  %451 = vmatpush3.bf16.msra.mxu1 %v500_v4  ;;  %v513_v27 = vld [vmem:[#allocation8 + $0x8] sm:$0xff]  }
  0x3b   :  { %468 = vmatprep.subr.bf16.mxu0 %v629_v0  ;;  %452 = vmatprep.subr.bf16.mxu1 %v629_v0  ;;  %v401_v29 = vld [vmem:[%s733_s4] ss:$0 sm:$0xff]  ;;  %s595_s4 = scalar_lea.vmem %s387_s25, 128 }
  0x3c   :  { %v410_v38 = vld [vmem:[%s735_s6] ss:$0 sm:$0xff]  ;;  %p596_p6 = scmp.ne.s32.totalorder %s387_s25, %s595_s4  ;;  %p601_p8 = scmp.lt.s32.totalorder %s595_s4, %s595_s4 }
  0x3d   :  { %445 = vmatmul.mubr.msk.bf16.vlgmr.msra.gmra.mxu0 %vm105_vm1, %v81_v5 }
  0x3e   :  { %484 = vmatprep.mubr.msk.bf16.mxu0 %vm630_vm0, %v629_v0  ;;  %453 = vmatpush3.bf16.msra.mxu1 %v501_v6  ;;  %p602_p9 = por %p601_p8, %p600_p7 }
  0x3f   :  { %454 = vmatprep.subr.bf16.mxu1 %v629_v0  ;;  %469 = vmatpush3.bf16.msra.mxu0 %v507_v12 }
  0x40   :  { %470 = vmatprep.subr.bf16.mxu0 %v629_v0  ;;  %p603_p10 = pnand %p602_p9, %p596_p6 }
  0x42   :  { %455 = vmatpush3.bf16.msra.mxu1 %v502_v7 }
  0x43   :  { %456 = vmatprep.subr.bf16.mxu1 %v629_v0  ;;  %471 = vmatpush3.bf16.msra.mxu0 %v508_v13 }
  0x44   :  { %472 = vmatprep.subr.bf16.mxu0 %v629_v0 }
  0x46   :  { %457 = vmatpush3.bf16.msra.mxu1 %v503_v8 }
  0x47   :  { %458 = vmatprep.subr.bf16.mxu1 %v629_v0  ;;  %473 = vmatpush3.bf16.msra.mxu0 %v509_v14 }
  0x48   :  { %474 = vmatprep.subr.bf16.mxu0 %v629_v0 }
  0x4a   :  { %459 = vmatpush3.bf16.msra.mxu1 %v504_v9 }
  0x4b   :  { %460 = vmatprep.subr.bf16.mxu1 %v629_v0  ;;  %475 = vmatpush3.bf16.msra.mxu0 %v510_v15 }
  0x4c   :  { %476 = vmatprep.subr.bf16.mxu0 %v629_v0 }
  0x4e   :  { %461 = vmatpush3.bf16.msra.mxu1 %v505_v10 }
  0x4f   :  { %462 = vmatprep.subr.bf16.mxu1 %v629_v0  ;;  %477 = vmatpush3.bf16.msra.mxu0 %v511_v16 }
  0x50   :  { %478 = vmatprep.subr.bf16.mxu0 %v629_v0 }
  0x52   :  { %463 = vmatpush3.bf16.msra.mxu1 %v506_v11 }
  0x53   :  { %479 = vmatpush3.bf16.msra.mxu0 %v512_v17 }
  0x54   :  { %480 = vmatprep.subr.bf16.mxu0 %v629_v0 }
  0x57   :  { %481 = vmatpush3.bf16.msra.mxu0 %v513_v27 }
  0x58   :  { %482 = vmatprep.subr.bf16.mxu0 %v629_v0 }
  0x5b   :  { %483 = vmatpush3.bf16.msra.mxu0 %v514_v28 }
  0xfd   :  { %v143_v19 = vpop.f32.mrf.mxu0 }
  0xfe   :  { %v144_v20 = vadd.f32 %v397_v18, %v143_v19 }
  0xff   :  { %v446_v21 = vpop.f32.mrf.mxu0 }
 0x100   :  { %vm149_vm2 = vcmp.ge.f32.partialorder %v144_v20, 0.0  ;;  %v150_v22 = vmul.f32 0.1, %v144_v20 }
 0x101   :  { %v146_v23 = vpop.f32.mrf.mxu0 }
 0x102   :  { %v151_v24 = vsel %vm149_vm2, %v144_v20, %v150_v22 }
 0x103   :  { %v447_v25 = vpop.f32.mrf.mxu0  ;;  %v152_v26 = vpack.c.bf16 %v151_v24, %v151_v24 }
 0x105   :  { %465 = vmatmul.mubr.bf16.vlgmr.msra.gmra.mxu1 %v152_v26 }
 0x1c5   :  { %v258_v30 = vpop.f32.mrf.mxu1 }
 0x1c6   :  { %v259_v31 = vadd.f32 %v401_v29, %v258_v30 }
 0x1c7   :  { %v466_v32 = vpop.f32.mrf.mxu1 }
 0x1c8   :  { %vm264_vm3 = vcmp.ge.f32.partialorder %v259_v31, 0.0  ;;  %v265_v33 = vmul.f32 0.1, %v259_v31 }
 0x1c9   :  { %v261_v34 = vpop.f32.mrf.mxu1 }
 0x1ca   :  { %v266_v35 = vsel %vm264_vm3, %v259_v31, %v265_v33 }
 0x1cb   :  { %v267_v36 = vpack.c.bf16 %v266_v35, %v266_v35  ;;  %v467_v37 = vpop.f32.mrf.mxu1 }
 0x1cd   :  { %485 = vmatmul.mubr.bf16.vlgmr.msra.gmra.mxu0 %v267_v36 }
 0x28d   :  { %v373_v39 = vpop.f32.mrf.mxu0 }
 0x28e   :  { %v374_v40 = vadd.f32 %v410_v38, %v373_v39 }
 0x28f   :  { %v486_v41 = vpop.f32.mrf.mxu0 }
 0x290   :  { %379 = vst [vmem:[#allocation10] sm:$0xff] %v374_v40 }
 0x291   :  { %v376_v42 = vpop.f32.mrf.mxu0 }
 0x292   :  { %606 = shalt.err (!%p603_p10)
}
 0x293   :  { %389 = dma.vmem_to_hbm [thread:$0]  %s387_s25, 128, %s736_s7, [#allocation4]   ;;  %v487_v43 = vpop.f32.mrf.mxu0 }
 0x294   :  { %621 = dma.done.wait [#allocation4], 128  }
 0x295   :  { %622 = vsyncadd [#allocation4], 4294967168 }
 0x296   :  { %393 = vsyncpa [#allocation3], 1 }
 0x297   :  { %394 = vsyncpa [#allocation6], 1 }
 0x298   :  { %395 = vsyncpa [#allocation9], 1 }
 0x299   :  { %396 = vsyncpa [#allocation4], 1 }

</bundles_post_ra>
